<compile_context>
chip_gen: v7x
topology: tpu7x:2x2x1
jax: 0.10.0
libtpu: 0.0.40
codegen_flags: <defaults>
</compile_context>

<pallas_src>
import jax
import jax.numpy as jnp
from jax.experimental import pallas as pl
from jax.experimental.pallas import tpu as pltpu

LN_EPS = 1e-5  # torch.nn.LayerNorm default eps


def _round_up(n, m):
    return pl.cdiv(n, m) * m


def mlp_kernel(x_ref, w1_ref, b1_ref, gamma_ref, beta_ref, w2_ref, b2_ref, o_ref):
    # ---- Linear(input_dim -> hidden_dim): bf16 MXU operands, f32 accumulation ----
    x = x_ref[...].astype(jnp.bfloat16)
    h = jnp.dot(x, w1_ref[...], preferred_element_type=jnp.float32) + b1_ref[...]

    # ---- Tanh (f32, EUP slot) ----
    h = jnp.tanh(h)

    # ---- LayerNorm over hidden dim (f32; gamma folded into the rsqrt scale) ----
    mean = jnp.mean(h, axis=-1, keepdims=True)
    centered = h - mean
    var = jnp.mean(centered * centered, axis=-1, keepdims=True)
    scale = jax.lax.rsqrt(var + LN_EPS) * gamma_ref[...]
    h = centered * scale + beta_ref[...]

    # ---- Dropout ----
    # TODO(synk): Dropout is identity in eval mode; training-mode masking via
    # pltpu.prng_seed / pltpu.prng_random_bits could be added behind a flag.

    # ---- Linear(hidden_dim -> output_dim_padded): bf16 MXU, lane-dense store ----
    o_ref[...] = (
        jnp.dot(h.astype(jnp.bfloat16), w2_ref[...],
                preferred_element_type=jnp.float32)
        + b2_ref[...]
    )


def mlp_forward(x, params, *, tile_b=None):
    """x: [B, input_dim] float32 -> [B, output_dim] float32 logits."""
    w1, b1, gamma, beta, w2, b2 = params
    B, in_dim = x.shape
    hid = w1.shape[1]
    out_dim = w2.shape[1]

    # ---- Lane-dense output: pad output columns to a multiple of 128. ----
    out_pad = int(_round_up(out_dim, 128))
    if out_pad != out_dim:
        w2 = jnp.zeros((hid, out_pad), w2.dtype).at[:, :out_dim].set(w2)
        b2 = jnp.zeros((1, out_pad), b2.dtype).at[:, :out_dim].set(b2)

    # ---- bf16 resident weights (halve VMEM residency; f32 acc in-kernel). ----
    w1_bf = w1.astype(jnp.bfloat16)
    w2_bf = w2.astype(jnp.bfloat16)

    # ---- Batch tile: multiple of 8 sublanes, auto-sized from a VMEM budget. ----
    weight_bytes = (in_dim * hid + hid * out_pad) * 2 + (3 * hid + out_pad) * 4
    per_row_bytes = 2 * (in_dim + out_pad) * 4  # double-buffered f32 x + out rows
    if tile_b is None:
        budget = 24 << 20  # keep well under the 32 MiB default scoped VMEM limit
        tile_b = max(8, (budget - weight_bytes) // max(per_row_bytes, 1))
        tile_b = min(tile_b, 1024)
    tb = int(min(max(int(tile_b) // 8 * 8, 8), _round_up(B, 8)))

    B_pad = int(_round_up(B, tb))
    if B_pad != B:
        x = jnp.pad(x, ((0, B_pad - B), (0, 0)))
    grid = (B_pad // tb,)

    # ---- VMEM limit (sized for v7x's 64 MiB physical VMEM, with headroom). ----
    vmem_bytes = tb * per_row_bytes + 2 * weight_bytes
    vmem_limit = int(min(max(2 * vmem_bytes, 16 << 20), 64 << 20))

    out = pl.pallas_call(
        mlp_kernel,
        out_shape=jax.ShapeDtypeStruct((B_pad, out_pad), jnp.float32),
        grid_spec=pltpu.PrefetchScalarGridSpec(
            num_scalar_prefetch=0,
            grid=grid,
            in_specs=[
                pl.BlockSpec((tb, in_dim), lambda i: (i, 0)),    # x: streamed
                pl.BlockSpec((in_dim, hid), lambda i: (0, 0)),   # w1: resident
                pl.BlockSpec((1, hid), lambda i: (0, 0)),        # b1
                pl.BlockSpec((1, hid), lambda i: (0, 0)),        # gamma
                pl.BlockSpec((1, hid), lambda i: (0, 0)),        # beta
                pl.BlockSpec((hid, out_pad), lambda i: (0, 0)),  # w2 (padded cols)
                pl.BlockSpec((1, out_pad), lambda i: (0, 0)),    # b2 (padded cols)
            ],
            out_specs=pl.BlockSpec((tb, out_pad), lambda i: (i, 0)),
        ),
        compiler_params=pltpu.CompilerParams(
            dimension_semantics=("parallel",),   # v7x: shard batch tiles over 2 TCs
            vmem_limit_bytes=vmem_limit,
        ),
    )(x, w1_bf, b1, gamma, beta, w2_bf, b2)

    return out[:B, :out_dim]


def init_params(key, input_dim, hidden_dim, output_dim, single_span=True):
    if not single_span:
        input_dim *= 2
    ks = jax.random.split(key, 4)
    # Deterministic synthetic init (uniform, roughly torch's fan-in scaling).
    bound1 = 1.0 / jnp.sqrt(input_dim)
    bound2 = 1.0 / jnp.sqrt(hidden_dim)
    w1 = jax.random.uniform(ks[0], (input_dim, hidden_dim), jnp.float32, -bound1, bound1)
    b1 = jax.random.uniform(ks[1], (1, hidden_dim), jnp.float32, -bound1, bound1)
    gamma = jnp.ones((1, hidden_dim), jnp.float32)   # LayerNorm weight
    beta = jnp.zeros((1, hidden_dim), jnp.float32)   # LayerNorm bias
    w2 = jax.random.uniform(ks[2], (hidden_dim, output_dim), jnp.float32, -bound2, bound2)
    b2 = jax.random.uniform(ks[3], (1, output_dim), jnp.float32, -bound2, bound2)
    return w1, b1, gamma, beta, w2, b2


def reference_forward_bf16(x, params):
    """Plain-JAX reference mirroring the kernel's precision (bf16 MXU, f32 acc)."""
    w1, b1, gamma, beta, w2, b2 = params
    h = jnp.dot(x.astype(jnp.bfloat16), w1.astype(jnp.bfloat16),
                preferred_element_type=jnp.float32) + b1
    h = jnp.tanh(h)
    mean = jnp.mean(h, axis=-1, keepdims=True)
    var = jnp.mean((h - mean) ** 2, axis=-1, keepdims=True)
    h = (h - mean) * jax.lax.rsqrt(var + LN_EPS) * gamma + beta
    return jnp.dot(h.astype(jnp.bfloat16), w2.astype(jnp.bfloat16),
                   preferred_element_type=jnp.float32) + b2


def reference_forward_f32(x, params):
    """Pure-f32 reference of the PyTorch module semantics (loose sanity bound)."""
    w1, b1, gamma, beta, w2, b2 = params
    h = jnp.tanh(x @ w1 + b1)
    mean = jnp.mean(h, axis=-1, keepdims=True)
    var = jnp.mean((h - mean) ** 2, axis=-1, keepdims=True)
    h = (h - mean) * jax.lax.rsqrt(var + LN_EPS) * gamma + beta
    return h @ w2 + b2


def _check(out, x, params, shape):
    assert out.shape == shape, (out.shape, shape)
    ref = reference_forward_bf16(x, params)
    assert jnp.allclose(out, ref, atol=2e-3, rtol=2e-3)
    ref_f32 = reference_forward_f32(x, params)
    assert jnp.allclose(out, ref_f32, atol=1e-1, rtol=1e-1)


if __name__ == "__main__":
    key = jax.random.PRNGKey(0)
    k_x, k_p, k_x2, k_p2 = jax.random.split(key, 4)

    # Case 1: batch=13 with tile_b=8 exercises batch padding AND a multi-step
    # (pipelined) grid with resident weights and a padded (4 -> 128) output.
    batch, input_dim, hidden_dim, output_dim = 13, 32, 32, 4
    x = jax.random.normal(k_x, (batch, input_dim), jnp.float32)
    params = init_params(k_p, input_dim, hidden_dim, output_dim, single_span=True)
    out = jax.block_until_ready(mlp_forward(x, params, tile_b=8))
    _check(out, x, params, (batch, output_dim))

    # Case 2: auto tile sizing, non-128-aligned feature dims, tiny class count.
    batch2, input_dim2, hidden_dim2, output_dim2 = 29, 48, 64, 3
    x2 = jax.random.normal(k_x2, (batch2, input_dim2), jnp.float32)
    params2 = init_params(k_p2, input_dim2, hidden_dim2, output_dim2, single_span=True)
    out2 = jax.block_until_ready(mlp_forward(x2, params2))
    _check(out2, x2, params2, (batch2, output_dim2))

    print("KERNEL_OK")
</pallas_src>

<mosaic_0001>
module attributes {stable_mosaic.version = 11 : i64} {
  func.func @mlp_kernel(%arg0: i32, %arg1: memref<8x32xf32, #tpu.memory_space<vmem>>, %arg2: memref<32x32xbf16, #tpu.memory_space<vmem>>, %arg3: memref<1x32xf32, #tpu.memory_space<vmem>>, %arg4: memref<1x32xf32, #tpu.memory_space<vmem>>, %arg5: memref<1x32xf32, #tpu.memory_space<vmem>>, %arg6: memref<32x128xbf16, #tpu.memory_space<vmem>>, %arg7: memref<1x128xf32, #tpu.memory_space<vmem>>, %arg8: memref<8x128xf32, #tpu.memory_space<vmem>>) attributes {dimension_semantics = [#tpu.dimension_semantics<parallel>], iteration_bounds = array<i64: 2>, scalar_prefetch = 0 : i64, scratch_operands = 0 : i64, tpu.core_type = #tpu.core_type<tc>, window_params = [{transform_indices = @transform_0, window_bounds = array<i64: 8, 32>}, {pipeline_mode = #tpu.pipeline_mode<synchronous>, transform_indices = @transform_1, window_bounds = array<i64: 32, 32>}, {pipeline_mode = #tpu.pipeline_mode<synchronous>, transform_indices = @transform_2, window_bounds = array<i64: 1, 32>}, {pipeline_mode = #tpu.pipeline_mode<synchronous>, transform_indices = @transform_3, window_bounds = array<i64: 1, 32>}, {pipeline_mode = #tpu.pipeline_mode<synchronous>, transform_indices = @transform_4, window_bounds = array<i64: 1, 32>}, {pipeline_mode = #tpu.pipeline_mode<synchronous>, transform_indices = @transform_5, window_bounds = array<i64: 32, 128>}, {pipeline_mode = #tpu.pipeline_mode<synchronous>, transform_indices = @transform_6, window_bounds = array<i64: 1, 128>}, {transform_indices = @transform_7, window_bounds = array<i64: 8, 128>}]} {
    %c0 = arith.constant 0 : index
    %c0_0 = arith.constant 0 : index
    %0 = vector.load %arg1[%c0, %c0_0] : memref<8x32xf32, #tpu.memory_space<vmem>>, vector<8x32xf32>
    %1 = arith.truncf %0 : vector<8x32xf32> to vector<8x32xbf16>
    %c0_1 = arith.constant 0 : index
    %c0_2 = arith.constant 0 : index
    %2 = vector.load %arg2[%c0_1, %c0_2] : memref<32x32xbf16, #tpu.memory_space<vmem>>, vector<32x32xbf16>
    %cst = arith.constant dense<0.000000e+00> : vector<8x32xf32>
    %3 = tpu.matmul %1, %2, %cst {dimension_numbers = #tpu.dot_dimension_numbers<[1], [0], [0], [1], [0, 0, 1, 1], [], []>} : vector<8x32xbf16>, vector<32x32xbf16>, vector<8x32xf32> -> vector<8x32xf32>
    %c0_3 = arith.constant 0 : index
    %c0_4 = arith.constant 0 : index
    %4 = vector.load %arg3[%c0_3, %c0_4] : memref<1x32xf32, #tpu.memory_space<vmem>>, vector<1x32xf32>
    %5 = vector.broadcast %4 : vector<1x32xf32> to vector<8x32xf32>
    %6 = arith.addf %3, %5 : vector<8x32xf32>
    %7 = math.tanh %6 : vector<8x32xf32>
    %cst_5 = arith.constant dense<0.000000e+00> : vector<8xf32>
    %8 = vector.multi_reduction <add>, %7, %cst_5 [1] : vector<8x32xf32> to vector<8xf32>
    %9 = vector.shape_cast %8 : vector<8xf32> to vector<8x1xf32>
    %cst_6 = arith.constant 3.200000e+01 : f32
    %10 = vector.broadcast %cst_6 : f32 to vector<8x1xf32>
    %11 = arith.divf %9, %10 : vector<8x1xf32>
    %12 = vector.broadcast %11 : vector<8x1xf32> to vector<8x32xf32>
    %13 = arith.subf %7, %12 : vector<8x32xf32>
    %14 = arith.mulf %13, %13 : vector<8x32xf32>
    %cst_7 = arith.constant dense<0.000000e+00> : vector<8xf32>
    %15 = vector.multi_reduction <add>, %14, %cst_7 [1] : vector<8x32xf32> to vector<8xf32>
    %16 = vector.shape_cast %15 : vector<8xf32> to vector<8x1xf32>
    %cst_8 = arith.constant 3.200000e+01 : f32
    %17 = vector.broadcast %cst_8 : f32 to vector<8x1xf32>
    %18 = arith.divf %16, %17 : vector<8x1xf32>
    %cst_9 = arith.constant 9.99999974E-6 : f32
    %19 = vector.broadcast %cst_9 : f32 to vector<8x1xf32>
    %20 = arith.addf %18, %19 : vector<8x1xf32>
    %21 = math.rsqrt %20 : vector<8x1xf32>
    %c0_10 = arith.constant 0 : index
    %c0_11 = arith.constant 0 : index
    %22 = vector.load %arg4[%c0_10, %c0_11] : memref<1x32xf32, #tpu.memory_space<vmem>>, vector<1x32xf32>
    %23 = vector.broadcast %21 : vector<8x1xf32> to vector<8x32xf32>
    %24 = vector.broadcast %22 : vector<1x32xf32> to vector<8x32xf32>
    %25 = arith.mulf %23, %24 : vector<8x32xf32>
    %26 = arith.mulf %13, %25 : vector<8x32xf32>
    %c0_12 = arith.constant 0 : index
    %c0_13 = arith.constant 0 : index
    %27 = vector.load %arg5[%c0_12, %c0_13] : memref<1x32xf32, #tpu.memory_space<vmem>>, vector<1x32xf32>
    %28 = vector.broadcast %27 : vector<1x32xf32> to vector<8x32xf32>
    %29 = arith.addf %26, %28 : vector<8x32xf32>
    %30 = arith.truncf %29 : vector<8x32xf32> to vector<8x32xbf16>
    %c0_14 = arith.constant 0 : index
    %c0_15 = arith.constant 0 : index
    %31 = vector.load %arg6[%c0_14, %c0_15] : memref<32x128xbf16, #tpu.memory_space<vmem>>, vector<32x128xbf16>
    %cst_16 = arith.constant dense<0.000000e+00> : vector<8x128xf32>
    %32 = tpu.matmul %30, %31, %cst_16 {dimension_numbers = #tpu.dot_dimension_numbers<[1], [0], [0], [1], [0, 0, 1, 1], [], []>} : vector<8x32xbf16>, vector<32x128xbf16>, vector<8x128xf32> -> vector<8x128xf32>
    %c0_17 = arith.constant 0 : index
    %c0_18 = arith.constant 0 : index
    %33 = vector.load %arg7[%c0_17, %c0_18] : memref<1x128xf32, #tpu.memory_space<vmem>>, vector<1x128xf32>
    %34 = vector.broadcast %33 : vector<1x128xf32> to vector<8x128xf32>
    %35 = arith.addf %32, %34 : vector<8x128xf32>
    %c0_19 = arith.constant 0 : index
    %c0_20 = arith.constant 0 : index
    %36 = vector.load %arg8[%c0_19, %c0_20] : memref<8x128xf32, #tpu.memory_space<vmem>>, vector<8x128xf32>
    tpu.vector_store %arg8[%c0_19, %c0_20], %35 {strides = array<i32>} : memref<8x128xf32, #tpu.memory_space<vmem>>, vector<8x128xf32>,
    return
  }
  func.func @transform_0(%arg0: i32) -> (i32, i32) {
    %c0_i32 = arith.constant 0 : i32
    %c0_i32_0 = arith.constant 0 : i32
    return %arg0, %c0_i32 : i32, i32
  }
  func.func @transform_1(%arg0: i32) -> (i32, i32) {
    %c0_i32 = arith.constant 0 : i32
    %c0_i32_0 = arith.constant 0 : i32
    %c0_i32_1 = arith.constant 0 : i32
    return %c0_i32, %c0_i32_0 : i32, i32
  }
  func.func @transform_2(%arg0: i32) -> (i32, i32) {
    %c0_i32 = arith.constant 0 : i32
    %c0_i32_0 = arith.constant 0 : i32
    %c0_i32_1 = arith.constant 0 : i32
    return %c0_i32, %c0_i32_0 : i32, i32
  }
  func.func @transform_3(%arg0: i32) -> (i32, i32) {
    %c0_i32 = arith.constant 0 : i32
    %c0_i32_0 = arith.constant 0 : i32
    %c0_i32_1 = arith.constant 0 : i32
    return %c0_i32, %c0_i32_0 : i32, i32
  }
  func.func @transform_4(%arg0: i32) -> (i32, i32) {
    %c0_i32 = arith.constant 0 : i32
    %c0_i32_0 = arith.constant 0 : i32
    %c0_i32_1 = arith.constant 0 : i32
    return %c0_i32, %c0_i32_0 : i32, i32
  }
  func.func @transform_5(%arg0: i32) -> (i32, i32) {
    %c0_i32 = arith.constant 0 : i32
    %c0_i32_0 = arith.constant 0 : i32
    %c0_i32_1 = arith.constant 0 : i32
    return %c0_i32, %c0_i32_0 : i32, i32
  }
  func.func @transform_6(%arg0: i32) -> (i32, i32) {
    %c0_i32 = arith.constant 0 : i32
    %c0_i32_0 = arith.constant 0 : i32
    %c0_i32_1 = arith.constant 0 : i32
    return %c0_i32, %c0_i32_0 : i32, i32
  }
  func.func @transform_7(%arg0: i32) -> (i32, i32) {
    %c0_i32 = arith.constant 0 : i32
    %c0_i32_0 = arith.constant 0 : i32
    return %arg0, %c0_i32 : i32, i32
  }
}

</mosaic_0001>

<bundles_post_ra>
// kernel: tpu_custom_call.1
= control target key start
LH: loop header
LB: loop body
LE: loop exit
PB: predicated region body
PF: predicated region fallthrough
CT: control target
= control target key end

     0   :  { %12 = vsyncpa [#allocation3], 0  ;;  %s1179_s0 = inlined_call_operand.hbm [shape: f32[16,32], index: 0, kind: input, shape index: {}]   ;;  %s1180_s1 = inlined_call_operand.hbm [shape: bf16[32,32], index: 1, kind: input, shape index: {}]   ;;  %s1181_s2 = inlined_call_operand.vmem [shape: f32[1,32], index: 2, kind: input, shape index: {}]   ;;  %s1182_s3 = inlined_call_operand.vmem [shape: f32[1,32], index: 3, kind: input, shape index: {}]   ;;  %s1183_s4 = inlined_call_operand.hbm [shape: f32[1,32], index: 4, kind: input, shape index: {}]   ;;  %s1184_s5 = inlined_call_operand.vmem [shape: bf16[32,128], index: 5, kind: input, shape index: {}]   ;;  %s1185_s6 = inlined_call_operand.vmem [shape: f32[1,128], index: 6, kind: input, shape index: {}]   ;;  %s1186_s7 = inlined_call_operand.hbm [shape: f32[16,128], index: 7, kind: output, shape index: {}]  }
   0x1   :  { %14 = vsyncpa [#allocation3 + $0x1], 0 }
   0x2   :  { %15 = vsyncpa [#allocation6], 0 }
   0x3   :  { %16 = vsyncpa [#allocation4], 0 }
   0x4   :  { %18 = vsyncpa [#allocation4 + $0x1], 0  ;;  %s926_s24 = smov 0   ;;  %s928_s25 = smov 0  }
   0x5   :  { %s930_s26 = smov 0   ;;  %s932_s27 = smov 0  }
   0x6 LB: > { %s947_s28 = sadd.s32 4294967295, %s876_s27   ;;  %s593_s29 = sadd.s32 4294967294, %s876_s27   ;;  %s876_s27 = sphi %s932_s27, %s1206_s27   ;;  %s872_s26 = sphi %s930_s26, %s1205_s26   ;;  %s868_s25 = sphi %s928_s25, %s1204_s25   ;;  %s864_s24 = sphi %s926_s24, %s1203_s24  }
   0x7   : > { %p44_p0 = scmp.ne.s32.totalorder %s868_s25, %s864_s24  ;;  %p1187_p1 = scmp.eq.s32.totalorder %s947_s28, 0 }
   0x8   : > { %p200_p3 = scmp.eq.s32.totalorder %s593_s29, 1  ;;  %p594_p5 = scmp.ge.s32.totalorder %s876_s27, 1 }
   0x9   : > { %p956_p4 = por %p1187_p1, %p44_p0  ;;  %p207_p7 = scmp.lt.s32.totalorder %s876_s27, 3 }
   0xa   : > { %p961_p6 = por %p200_p3, %p44_p0  ;;  %s878_s10 = smov [#allocation5]  }
   0xb   : > { %s1190_s30 = scalar_select %p956_p4, 1, 0 }
   0xc   : > { %s1191_s8 = scalar_select %p961_p6, 1, 0 }
   0xd   : > { %p966_p8 = pnand %p594_p5, %p207_p7  ;;  %s219_s11 = sshll.u32 %s878_s10, 4  ;;  %s970_s11 = int_to_ptr.vmem [resolvable:$true] %s219_s11 }
   0xe   : > { %s879_s13 = smov [#allocation7]   ;;  %s720_s17 = scalar_lea.hbm %s1180_s1, 256 }
   0xf   : > { %p653_p9 = pneg %p966_p8  ;;  %s239_s14 = sshll.u32 %s879_s13, 4  ;;  %s981_s14 = int_to_ptr.vmem [resolvable:$true] %s239_s14 }
  0x10   : > { %p721_p12 = scmp.ne.s32.totalorder %s1180_s1, %s720_s17  ;;  %p727_p5 = scmp.lt.u32.totalorder %s720_s17, %s1180_s1 }
  0x11   : > { %p977_p11 = pnand %p653_p9, %p1187_p1 }
  0x13   : > { %p722_p13 = pneg %p977_p11 }
  0x15   : > { %p723_p0 = pnand %p722_p13, %p721_p12 }
  0x17   : > { %p724_p3 = pneg %p723_p0 }
  0x19   : > { %p729_p7 = pnand %p727_p5, %p724_p3 }
  0x1b   : > { %732 = shalt.err (!%p729_p7)
}
  0x1c   : > { %s733_s22 = scalar_lea.vmem %s970_s11, 256  ;;  %p741_p2 = scmp.lt.s32.totalorder %s970_s11, %s970_s11 }
  0x1d   : > { %p734_p9 = scmp.ne.s32.totalorder %s970_s11, %s733_s22  ;;  %p742_p12 = scmp.lt.s32.totalorder %s733_s22, %s733_s22 }
  0x1f   : > { %p736_p10 = pnand %p734_p9, %p722_p13  ;;  %p743_p0 = por %p742_p12, %p741_p2 }
  0x21   : > { %p737_p1 = pneg %p736_p10 }
  0x23   : > { %p744_p6 = pnand %p743_p0, %p737_p1 }
  0x25   : > { %747 = shalt.err (!%p744_p6)
}
  0x26   : > { %s880_s23 = smov 64   ;;  %s881_s29 = smov 4  }
  0x27   : > { %656 = dma.hbm_to_vmem [thread:$0]  (!%p977_p11), %s1180_s1, 256, %s970_s11, [#allocation6], %s880_s23, %s880_s23, %s881_s29  }
  0x28   : > { %s748_s17 = scalar_lea.hbm %s1183_s4, 16 }
  0x29   : > { %p749_p2 = scmp.ne.s32.totalorder %s1183_s4, %s748_s17  ;;  %p755_p10 = scmp.lt.u32.totalorder %s748_s17, %s1183_s4 }
  0x2b   : > { %p751_p1 = pnand %p749_p2, %p722_p13 }
  0x2d   : > { %p752_p6 = pneg %p751_p1 }
  0x2f   : > { %p757_p3 = pnand %p755_p10, %p752_p6 }
  0x31   : > { %760 = shalt.err (!%p757_p3)
}
  0x32   : > { %s761_s11 = scalar_lea.vmem %s981_s14, 16  ;;  %s768_s22 = scalar_lea.vmem %s981_s14, 32 }
  0x33   : > { %p762_p5 = scmp.ne.s32.totalorder %s981_s14, %s761_s11  ;;  %p769_p12 = scmp.lt.s32.totalorder %s981_s14, %s981_s14 }
  0x34   : > { %p770_p0 = scmp.lt.s32.totalorder %s768_s22, %s761_s11 }
  0x35   : > { %p764_p7 = pnand %p762_p5, %p722_p13 }
  0x36   : > { %p771_p2 = por %p770_p0, %p769_p12 }
  0x37   : > { %p765_p9 = pneg %p764_p7 }
  0x39   : > { %p772_p1 = pnand %p771_p2, %p765_p9 }
  0x3b   : > { %775 = shalt.err (!%p772_p1)
}
  0x3c   : > { %659 = dma.hbm_to_vmem [thread:$0]  (!%p977_p11), %s1183_s4, 16, %s981_s14, [#allocation6]  }
  0x3d   : > { %s1037_s10 = sadd.s32 1, %s876_s27   ;;  %s31_s12 = sadd.s32 1, %s872_s26 }
  0x3e   : > { %s28_s13 = ssub.s32 %s876_s27, %s1037_s10  ;;  %p38_p13 = scmp.ne.s32.totalorder %s872_s26, %s868_s25 }
  0x3f   : > { %p29_p6 = scmp.eq.s32.totalorder %s28_s13, 0  ;;  %p39_p10 = scmp.eq.s32.totalorder %s876_s27, 0 }
  0x40   : > { %p1194_p3 = scmp.eq.s32.totalorder %s947_s28, 1  ;;  %p670_p7 = scmp.lt.s32.totalorder %s876_s27, 2 }
  0x41   : > { %s1053_s16 = scalar_select %p29_p6, %s872_s26, %s31_s12  }
  0x42   : > { %p1047_p5 = por %p1194_p3, %p38_p13  ;;  %p40_p9 = por %p39_p10, %p38_p13 }
  0x43   : > { %s256_s17 = sand.u32 1, %s872_s26   ;;  %s599_s14 = sshll.u32 %s876_s27, 7 }
  0x44   : > { %s1195_s15 = scalar_select %p1047_p5, 1, 0 }
  0x45   : > { %s598_s18 = sshll.u32 %s256_s17, 3  ;;  %s1060_s21 = scalar_lea.hbm %s1179_s0, %s599_s14 }
  0x46   : > { %s260_s11 = scalar_lea.vmem [#allocation2], %s598_s18  ;;  %p1064_p11 = pnand %p670_p7, %p40_p9 }
  0x47   : > { %s267_s22 = sshll.u32 %s260_s11, 4  ;;  %s257_s29 = scalar_lea.sflag [#allocation3], %s256_s17  ;;  %s1062_s22 = int_to_ptr.vmem [resolvable:$true] %s267_s22 }
  0x48   : > { %s776_s12 = scalar_lea.hbm %s1060_s21, 128  ;;  %p778_p0 = pneg %p1064_p11 }
  0x49   : > { %p777_p12 = scmp.ne.s32.totalorder %s1060_s21, %s776_s12  ;;  %s781_s14 = scalar_lea.hbm %s1179_s0, 256 }
  0x4a   : > { %p782_p13 = scmp.lt.u32.totalorder %s1060_s21, %s1179_s0  ;;  %p783_p6 = scmp.lt.u32.totalorder %s781_s14, %s776_s12 }
  0x4b   : > { %p779_p2 = pnand %p778_p0, %p777_p12  ;;  %p785_p3 = scmp.lt.u32.totalorder %s776_s12, %s1060_s21 }
  0x4c   : > { %p784_p10 = por %p783_p6, %p782_p13 }
  0x4d   : > { %p780_p1 = pneg %p779_p2 }
  0x4e   : > { %p786_p7 = por %p785_p3, %p784_p10 }
  0x50   : > { %p787_p9 = pnand %p786_p7, %p780_p1 }
  0x52   : > { %790 = shalt.err (!%p787_p9)
}
  0x53   : > { %s791_s17 = scalar_lea.vmem %s1062_s22, 128  ;;  %s882_s11 = smov [#allocation2]  }
  0x54   : > { %p792_p12 = scmp.ne.s32.totalorder %s1062_s22, %s791_s17  ;;  %s796_s13 = sshll.u32 %s882_s11, 4  ;;  %s797_s13 = int_to_ptr.vmem [resolvable:$false] %s796_s13 }
  0x55   : > { %s798_s18 = scalar_lea.vmem %s797_s13, 256  ;;  %p799_p4 = scmp.lt.s32.totalorder %s1062_s22, %s797_s13 }
  0x56   : > { %p794_p2 = pnand %p792_p12, %p778_p0  ;;  %p800_p13 = scmp.lt.s32.totalorder %s798_s18, %s791_s17 }
  0x58   : > { %p795_p5 = pneg %p794_p2  ;;  %p801_p6 = por %p800_p13, %p799_p4 }
  0x5a   : > { %p802_p10 = pnand %p801_p6, %p795_p5 }
  0x5c   : > { %805 = shalt.err (!%p802_p10)
}
  0x5d   : > { %663 = dma.hbm_to_vmem [thread:$0]  (!%p1064_p11), %s1060_s21, 128, %s1062_s22, %s257_s29  }
  0x5e   : > { %276 = sbr.rel (%p966_p8) target bundleno = 883 (0x373), region = 48  ;;  %s1096_s12 = sand.u32 (!%p966_p8), 1, %s868_s25  }
  0x5f   : > { %s601_s14 = sshll.u32 (!%p966_p8), %s1096_s12, 3  ;;  %s279_s19 = scalar_lea.sflag (!%p966_p8), [#allocation3], %s1096_s12 }
  0x60   : > { %s282_s20 = scalar_lea.vmem (!%p966_p8), [#allocation2], %s601_s14  ;;  %p1197_p4 = scmp.ne.s32.totalorder (!%p966_p8), %s1190_s30, 0 }
  0x65   : > { %851 = dma.done.wait (%p1197_p4), %s279_s19, 128  }
  0x66   : > { %853 = vsyncadd (%p1197_p4), %s279_s19, 4294967168  ;;  %p1198_p5 = scmp.eq.s32.totalorder %s947_s28, 0 }
  0x68   : > { %855 = dma.done.wait (%p1198_p5), [#allocation6], 272   ;;  %p1199_p8 = pmov %p1198_p5 }
  0x69   : > { %v883_v0 = vmov 0.0   ;;  %vm884_vm0 = vmmov 0   ;;  %v712_v1 = vld [vmem:[#allocation5] sm:$0xff]   ;;  %v713_v2 = vld [vmem:[#allocation5 + $0x8] sm:$0xff]   ;;  %v322_v3 = vld [vmem:[%s282_s20] sm:$0xff]  ;;  %vm347_vm1 = vcmask 261120  }
  0x6a   : > { %857 = vsyncadd (%p1199_p8), [#allocation6], 4294967024  ;;  %625 = vmatprep.subr.bf16.mxu0 %v883_v0  ;;  %629 = vmatprep.mubr.msk.bf16.mxu0 %vm884_vm0, %v883_v0  ;;  %v323_v4 = vpack.c.bf16 %v322_v3, %v322_v3  ;;  %v605_v5 = vld [vmem:[%s1181_s2] ss:$0 sm:$0xff]  ;;  %v715_v19 = vld [vmem:[%s1184_s5 + $0x8] sm:$0xff]   ;;  %s616_s19 = sshll.u32 %s947_s28, 7 }
  0x6b   : > { %633 = vmatprep.subr.bf16.mxu1 %v883_v0  ;;  %637 = vmatprep.mubr.msk.bf16.mxu1 %vm884_vm0, %v883_v0  ;;  %v714_v18 = vld [vmem:[%s1184_s5] sm:$0xff]   ;;  %s320_s20 = scalar_lea.vmem [#allocation8], %s601_s14  ;;  %s1135_s22 = scalar_lea.hbm %s1186_s7, %s616_s19 }
  0x6c   : > { %626 = vmatpush3.bf16.msra.mxu0 %v712_v1  ;;  %634 = vmatpush3.bf16.msra.mxu1 %v714_v18  ;;  %v609_v23 = vld [vmem:[%s1182_s3] ss:$0 sm:$0xff]  ;;  %s504_s30 = sshll.u32 %s320_s20, 4  ;;  %s491_s28 = scalar_lea.sflag [#allocation4], %s1096_s12  ;;  %s1137_s30 = int_to_ptr.vmem [resolvable:$true] %s504_s30 }
  0x6d   : > { %627 = vmatprep.subr.bf16.mxu0 %v883_v0  ;;  %635 = vmatprep.subr.bf16.mxu1 %v883_v0  ;;  %v610_v26 = vld [vmem:[#allocation7] ss:$0 sm:$0xff]  ;;  %s806_s23 = scalar_lea.vmem %s1137_s30, 128  ;;  %p1200_p0 = scmp.ne.s32.totalorder %s1195_s15, 0 }
  0x6e   : > { %v611_v30 = vld [vmem:[%s1185_s6] ss:$0 sm:$0xff]  ;;  %p807_p11 = scmp.ne.s32.totalorder %s1137_s30, %s806_s23  ;;  %s885_s14 = smov [#allocation8]  }
  0x6f   : > { %s810_s29 = sshll.u32 %s885_s14, 4  ;;  %s811_s29 = int_to_ptr.vmem [resolvable:$false] %s810_s29 }
  0x70   : > { %628 = vmatpush3.bf16.msra.mxu0 %v713_v2  ;;  %636 = vmatpush3.bf16.msra.mxu1 %v715_v19  ;;  %p808_p1 = pnand %p807_p11, %p1200_p0  ;;  %s812_s17 = scalar_lea.vmem %s811_s29, 256 }
  0x71   : > { %p813_p7 = scmp.lt.s32.totalorder %s1137_s30, %s811_s29  ;;  %p814_p9 = scmp.lt.s32.totalorder %s812_s17, %s806_s23 }
  0x72   : > { %p809_p3 = pneg %p808_p1 }
  0x73   : > { %630 = vmatmul.mubr.msk.bf16.vlgmr.msra.gmra.mrb[0].mxu0 %vm347_vm1, %v323_v4  ;;  %p815_p12 = por %p814_p9, %p813_p7 }
  0x75   : > { %p816_p2 = pnand %p815_p12, %p809_p3 }
 0x146   : > { %v385_v6 = vpop.f32.mrb[0].mxu0 }
 0x147   : > { %v386_v7 = vadd.f32 %v605_v5, %v385_v6  ;;  %v631_v8 = vpop.f32.mrb[1].mxu0 }
 0x148   : > { %v388_v9 = vpop.f32.mrb[2].mxu0 }
 0x149   : > { %716 = vtanh.f32 %v386_v7  ;;  %v632_v10 = vpop.f32.mrb[3].mxu0 }
 0x153   : > { %v717_v11 = vpop.eup %716 }
 0x154   : > { %v392_v12 = vsel %vm347_vm1, %v717_v11, 0.0 }
 0x155   : > { %393 = vadd.xlane.f32.xlu0 %v392_v12 }
 0x1e2   : > { %v394_v13 = vpop.xlane.xlu0 %393 }
 0x1e3   : > { %v396_v14 = vmul.f32 0.03125, %v394_v13 }
 0x1e5   : > { %v397_v15 = vsub.f32 %v717_v11, %v396_v14 }
 0x1e7   : > { %v398_v16 = vmul.f32 %v397_v15, %v397_v15 }
 0x1e9   : > { %v399_v17 = vsel %vm347_vm1, %v398_v16, 0.0 }
 0x1ea   : > { %400 = vadd.xlane.f32.xlu0 %v399_v17 }
 0x277   : > { %v401_v20 = vpop.xlane.xlu0 %400 }
 0x278   : > { %v402_v21 = vmul.f32 0.03125, %v401_v20 }
 0x27a   : > { %v403_v22 = vadd.f32 1e-05, %v402_v21 }
 0x27c   : > { %718 = vrsqrt.f32 %v403_v22 }
 0x286   : > { %v719_v24 = vpop.eup %718 }
 0x287   : > { %v412_v25 = vmul.f32 %v719_v24, %v609_v23 }
 0x289   : > { %v413_v27 = vmul.f32 %v412_v25, %v397_v15 }
 0x28b   : > { %v421_v28 = vadd.f32 %v610_v26, %v413_v27 }
 0x28d   : > { %v422_v29 = vpack.c.bf16 %v421_v28, %v421_v28 }
 0x28f   : > { %638 = vmatmul.mubr.msk.bf16.vlgmr.msra.gmra.mrb[0].mxu1 %vm347_vm1, %v422_v29 }
 0x362   : > { %v483_v31 = vpop.f32.mrb[0].mxu1 }
 0x363   : > { %v484_v32 = vadd.f32 %v611_v30, %v483_v31  ;;  %v639_v33 = vpop.f32.mrb[1].mxu1 }
 0x364   : > { %v486_v34 = vpop.f32.mrb[2].mxu1 }
 0x365   : > { %489 = vst [vmem:[%s320_s20] sm:$0xff] %v484_v32  ;;  %v640_v35 = vpop.f32.mrb[3].mxu1 }
 0x366   : > { %819 = shalt.err (!%p816_p2)
}
 0x367   : > { %s820_s12 = scalar_lea.hbm %s1135_s22, 128  ;;  %s824_s18 = scalar_lea.hbm %s1186_s7, 256 }
 0x368   : > { %p821_p13 = scmp.ne.s32.totalorder %s1135_s22, %s820_s12  ;;  %p825_p4 = scmp.lt.u32.totalorder %s1135_s22, %s1186_s7 }
 0x369   : > { %p826_p5 = scmp.lt.u32.totalorder %s824_s18, %s820_s12  ;;  %p828_p11 = scmp.lt.u32.totalorder %s820_s12, %s1135_s22 }
 0x36a   : > { %p822_p6 = pnand %p821_p13, %p1200_p0 }
 0x36b   : > { %p827_p8 = por %p826_p5, %p825_p4 }
 0x36c   : > { %p823_p10 = pneg %p822_p6 }
 0x36d   : > { %p829_p1 = por %p828_p11, %p827_p8 }
 0x36f   : > { %p830_p3 = pnand %p829_p1, %p823_p10 }
 0x371   : > { %833 = shalt.err (!%p830_p3)
}
 0x372   : > { %651 = dma.vmem_to_hbm [thread:$0]  (%p1200_p0), %s1137_s30, 128, %s1135_s22, %s491_s28  }
 0x373 PF: > { %s516_s9 = sand.u32 1, %s864_s24   ;;  %p1201_p7 = scmp.ne.s32.totalorder %s1191_s8, 0 }
 0x374   : > { %p1202_p9 = scmp.ge.s32.totalorder %s876_s27, 2  ;;  %s517_s21 = scalar_lea.sflag [#allocation4], %s516_s9 }
 0x376   : > { %p665_p12 = pnand %p1202_p9, %p1201_p7 }
 0x378   : > { %859 = dma.done.wait (!%p665_p12), %s517_s21, 128  }
 0x379   : > { %861 = vsyncadd (!%p665_p12), %s517_s21, 4294967168  ;;  %p21_p2 = scmp.ge.s32.totalorder %s1037_s10, 4   ;;  %s1203_s24 = smov %s868_s25 }
 0x37a   : > { %s1204_s25 = smov %s872_s26  ;;  %s1205_s26 = smov %s1053_s16 }
 0x37b   : > { %s1206_s27 = smov %s1037_s10  ;;  %23 = sbr.rel (!%p21_p2) target bundleno = 6 (0x6), region = 101 }
 0x382   :  { %522 = vsyncpa [#allocation3], 1 }
 0x383   :  { %524 = vsyncpa [#allocation3 + $0x1], 1 }
 0x384   :  { %525 = vsyncpa [#allocation6], 1 }
 0x385   :  { %526 = vsyncpa [#allocation4], 1 }
 0x386   :  { %528 = vsyncpa [#allocation4 + $0x1], 1 }

</bundles_post_ra>
